<compile_context>
chip_gen: v6e
topology: v6e:2x2x1
jax: 0.10.0
libtpu: 0.0.40
codegen_flags: <defaults>
</compile_context>

<pallas_src>
import jax
import jax.numpy as jnp
from jax.experimental import pallas as pl
from jax.experimental.pallas import tpu as pltpu


def _round_up(a, m):
    return (a + m - 1) // m * m


def _cdiv(a, b):
    return (a + b - 1) // b


def _mlp_softmax_kernel(x_ref, w1_ref, b1_ref, w2_ref, b2_ref,
                        w3_ref, b3_ref, o_ref):
    # fc1: cast f32 features to bf16 only at the MXU input; accumulate in f32.
    x = x_ref[...].astype(jnp.bfloat16)
    h1 = jnp.dot(x, w1_ref[...], preferred_element_type=jnp.float32)
    h1 = jnp.maximum(h1 + b1_ref[...], 0.0)
    # fc2
    h2 = jnp.dot(h1.astype(jnp.bfloat16), w2_ref[...],
                 preferred_element_type=jnp.float32)
    h2 = jnp.maximum(h2 + b2_ref[...], 0.0)
    # fc3 + numerically-stable softmax over the padded 128-lane class dim.
    # Padded class lanes carry a -1e30 bias -> exp() == 0, no prob. leakage.
    logits = jnp.dot(h2.astype(jnp.bfloat16), w3_ref[...],
                     preferred_element_type=jnp.float32)
    logits = logits + b3_ref[...]
    m = jnp.max(logits, axis=-1, keepdims=True)
    e = jnp.exp(logits - m)
    denom = jnp.sum(e, axis=-1, keepdims=True)
    o_ref[...] = (e / denom).astype(o_ref.dtype)   # exact div: rows sum to 1


def prepare_params(params):
    """One-time: pad all dims to 128-lane multiples and cast weights to bf16.

    Done once (not per forward call) so the only per-step weight traffic is the
    resident DMA into VMEM.
    """
    w1, b1, w2, b2, w3, b3 = params
    D, H = w1.shape
    C = w3.shape[1]
    Dp, Hp, Cp = _round_up(D, 128), _round_up(H, 128), _round_up(C, 128)

    w1p = jnp.zeros((Dp, Hp), jnp.bfloat16).at[:D, :H].set(w1.astype(jnp.bfloat16))
    w2p = jnp.zeros((Hp, Hp), jnp.bfloat16).at[:H, :H].set(w2.astype(jnp.bfloat16))
    w3p = jnp.zeros((Hp, Cp), jnp.bfloat16).at[:H, :C].set(w3.astype(jnp.bfloat16))
    b1p = jnp.zeros((1, Hp), jnp.float32).at[:, :H].set(b1.astype(jnp.float32))
    b2p = jnp.zeros((1, Hp), jnp.float32).at[:, :H].set(b2.astype(jnp.float32))
    # Padded class columns get a huge negative bias so softmax ignores them.
    b3p = jnp.full((1, Cp), -1e30, jnp.float32).at[:, :C].set(b3.astype(jnp.float32))

    return dict(w1=w1p, b1=b1p, w2=w2p, b2=b2p, w3=w3p, b3=b3p,
                D=D, Dp=Dp, Hp=Hp, C=C, Cp=Cp)


def _choose_batch_tile(B, block_b, row_mult=8):
    """Pick a batch tile that (a) minimizes dead padding rows and (b) gives at
    least 2 grid steps when the batch allows, so v7x's two TensorCores both get
    work under dimension_semantics=("parallel",)."""
    n_tiles = _cdiv(B, block_b)
    if n_tiles == 1 and B >= 2 * row_mult:
        n_tiles = 2
    tb = _round_up(_cdiv(B, n_tiles), row_mult)
    b_pad = _round_up(B, tb)
    return tb, b_pad


def neural_net_forward(x_nchw, prepped, *, block_b=256):
    """x_nchw: [B, C, H, W] float32 images (NCHW, like the PyTorch module)."""
    B = x_nchw.shape[0]
    Dp, Hp, Cp, D, C = (prepped["Dp"], prepped["Hp"], prepped["Cp"],
                        prepped["D"], prepped["C"])

    # --- feature extraction glue (stand-in: flatten each image) ---
    # TODO(synk): replace with the real FeatureExtractor output.
    features = x_nchw.reshape(B, -1).astype(jnp.float32)
    assert features.shape[1] == D

    tb, b_pad = _choose_batch_tile(B, block_b)
    pad_rows, pad_cols = b_pad - B, Dp - D
    if pad_rows or pad_cols:
        features = jnp.pad(features, ((0, pad_rows), (0, pad_cols)))

    # Weights / biases: constant block index -> DMA'd once, VMEM-resident.
    resident = lambda shape: pl.BlockSpec(shape, lambda i: (0, 0))

    out = pl.pallas_call(
        _mlp_softmax_kernel,
        out_shape=jax.ShapeDtypeStruct((b_pad, Cp), jnp.float32),
        grid_spec=pltpu.PrefetchScalarGridSpec(
            num_scalar_prefetch=0,
            grid=(b_pad // tb,),
            in_specs=[
                pl.BlockSpec((tb, Dp), lambda i: (i, 0)),    # feature tile (f32)
                resident((Dp, Hp)), resident((1, Hp)),       # fc1 (bf16 / f32)
                resident((Hp, Hp)), resident((1, Hp)),       # fc2
                resident((Hp, Cp)), resident((1, Cp)),       # fc3
            ],
            out_specs=pl.BlockSpec((tb, Cp), lambda i: (i, 0)),  # lane-dense
        ),
        compiler_params=pltpu.CompilerParams(
            dimension_semantics=("parallel",),               # v7x: 2 TCs
        ),
    )(features, prepped["w1"], prepped["b1"], prepped["w2"], prepped["b2"],
      prepped["w3"], prepped["b3"])

    return out[:B, :C]


def init_params(key, in_features, n_hiddens, n_classes):
    k1, k2, k3 = jax.random.split(key, 3)
    scale = 0.02
    w1 = scale * jax.random.normal(k1, (in_features, n_hiddens), jnp.float32)
    b1 = jnp.zeros((1, n_hiddens), jnp.float32)
    w2 = scale * jax.random.normal(k2, (n_hiddens, n_hiddens), jnp.float32)
    b2 = jnp.zeros((1, n_hiddens), jnp.float32)
    w3 = scale * jax.random.normal(k3, (n_hiddens, n_classes), jnp.float32)
    b3 = jnp.zeros((1, n_classes), jnp.float32)
    return (w1, b1, w2, b2, w3, b3)


if __name__ == "__main__":
    key = jax.random.PRNGKey(0)
    kx, kp = jax.random.split(key)

    B, C_in, Hs, Ws = 2, 4, 16, 16       # small NCHW input
    n_hiddens, n_classes = 32, 10
    in_features = C_in * Hs * Ws         # flatten feature-extractor stand-in

    x = jax.random.normal(kx, (B, C_in, Hs, Ws), jnp.float32)
    params = init_params(kp, in_features, n_hiddens, n_classes)
    prepped = prepare_params(params)     # padded + bf16, done ONCE

    y = neural_net_forward(x, prepped)
    jax.block_until_ready(y)

    # Reference in the same mixed precision (bf16 at dot inputs, f32 math).
    w1, b1, w2, b2, w3, b3 = params
    feats = x.reshape(B, -1).astype(jnp.bfloat16)
    h = jnp.maximum(jnp.dot(feats, w1.astype(jnp.bfloat16),
                            preferred_element_type=jnp.float32) + b1, 0.0)
    h = jnp.maximum(jnp.dot(h.astype(jnp.bfloat16), w2.astype(jnp.bfloat16),
                            preferred_element_type=jnp.float32) + b2, 0.0)
    logits = jnp.dot(h.astype(jnp.bfloat16), w3.astype(jnp.bfloat16),
                     preferred_element_type=jnp.float32) + b3
    ref = jax.nn.softmax(logits, axis=1)

    assert y.shape == (B, n_classes)
    assert jnp.allclose(jnp.sum(y, axis=1), 1.0, atol=1e-3), "softmax rows != 1"
    assert jnp.allclose(y, ref, atol=1e-2, rtol=1e-2), "mismatch vs reference"

    print("KERNEL_OK")
</pallas_src>

<mosaic_0001>
module attributes {stable_mosaic.version = 11 : i64} {
  func.func @_mlp_softmax_kernel(%arg0: i32, %arg1: memref<8x1024xf32, #tpu.memory_space<vmem>>, %arg2: memref<1024x128xbf16, #tpu.memory_space<vmem>>, %arg3: memref<1x128xf32, #tpu.memory_space<vmem>>, %arg4: memref<128x128xbf16, #tpu.memory_space<vmem>>, %arg5: memref<1x128xf32, #tpu.memory_space<vmem>>, %arg6: memref<128x128xbf16, #tpu.memory_space<vmem>>, %arg7: memref<1x128xf32, #tpu.memory_space<vmem>>, %arg8: memref<8x128xf32, #tpu.memory_space<vmem>>) attributes {dimension_semantics = [#tpu.dimension_semantics<parallel>], iteration_bounds = array<i64: 1>, scalar_prefetch = 0 : i64, scratch_operands = 0 : i64, tpu.core_type = #tpu.core_type<tc>, window_params = [{transform_indices = @transform_0, window_bounds = array<i64: 8, 1024>}, {pipeline_mode = #tpu.pipeline_mode<synchronous>, transform_indices = @transform_1, window_bounds = array<i64: 1024, 128>}, {pipeline_mode = #tpu.pipeline_mode<synchronous>, transform_indices = @transform_2, window_bounds = array<i64: 1, 128>}, {pipeline_mode = #tpu.pipeline_mode<synchronous>, transform_indices = @transform_3, window_bounds = array<i64: 128, 128>}, {pipeline_mode = #tpu.pipeline_mode<synchronous>, transform_indices = @transform_4, window_bounds = array<i64: 1, 128>}, {pipeline_mode = #tpu.pipeline_mode<synchronous>, transform_indices = @transform_5, window_bounds = array<i64: 128, 128>}, {pipeline_mode = #tpu.pipeline_mode<synchronous>, transform_indices = @transform_6, window_bounds = array<i64: 1, 128>}, {transform_indices = @transform_7, window_bounds = array<i64: 8, 128>}]} {
    %c0 = arith.constant 0 : index
    %c0_0 = arith.constant 0 : index
    %0 = vector.load %arg1[%c0, %c0_0] : memref<8x1024xf32, #tpu.memory_space<vmem>>, vector<8x1024xf32>
    %1 = arith.truncf %0 : vector<8x1024xf32> to vector<8x1024xbf16>
    %c0_1 = arith.constant 0 : index
    %c0_2 = arith.constant 0 : index
    %2 = vector.load %arg2[%c0_1, %c0_2] : memref<1024x128xbf16, #tpu.memory_space<vmem>>, vector<1024x128xbf16>
    %cst = arith.constant dense<0.000000e+00> : vector<8x128xf32>
    %3 = tpu.matmul %1, %2, %cst {dimension_numbers = #tpu.dot_dimension_numbers<[1], [0], [0], [1], [0, 0, 1, 1], [], []>} : vector<8x1024xbf16>, vector<1024x128xbf16>, vector<8x128xf32> -> vector<8x128xf32>
    %c0_3 = arith.constant 0 : index
    %c0_4 = arith.constant 0 : index
    %4 = vector.load %arg3[%c0_3, %c0_4] : memref<1x128xf32, #tpu.memory_space<vmem>>, vector<1x128xf32>
    %5 = vector.broadcast %4 : vector<1x128xf32> to vector<8x128xf32>
    %6 = arith.addf %3, %5 : vector<8x128xf32>
    %cst_5 = arith.constant 0.000000e+00 : f32
    %7 = vector.broadcast %cst_5 : f32 to vector<8x128xf32>
    %8 = arith.maximumf %6, %7 : vector<8x128xf32>
    %9 = arith.truncf %8 : vector<8x128xf32> to vector<8x128xbf16>
    %c0_6 = arith.constant 0 : index
    %c0_7 = arith.constant 0 : index
    %10 = vector.load %arg4[%c0_6, %c0_7] : memref<128x128xbf16, #tpu.memory_space<vmem>>, vector<128x128xbf16>
    %cst_8 = arith.constant dense<0.000000e+00> : vector<8x128xf32>
    %11 = tpu.matmul %9, %10, %cst_8 {dimension_numbers = #tpu.dot_dimension_numbers<[1], [0], [0], [1], [0, 0, 1, 1], [], []>} : vector<8x128xbf16>, vector<128x128xbf16>, vector<8x128xf32> -> vector<8x128xf32>
    %c0_9 = arith.constant 0 : index
    %c0_10 = arith.constant 0 : index
    %12 = vector.load %arg5[%c0_9, %c0_10] : memref<1x128xf32, #tpu.memory_space<vmem>>, vector<1x128xf32>
    %13 = vector.broadcast %12 : vector<1x128xf32> to vector<8x128xf32>
    %14 = arith.addf %11, %13 : vector<8x128xf32>
    %cst_11 = arith.constant 0.000000e+00 : f32
    %15 = vector.broadcast %cst_11 : f32 to vector<8x128xf32>
    %16 = arith.maximumf %14, %15 : vector<8x128xf32>
    %17 = arith.truncf %16 : vector<8x128xf32> to vector<8x128xbf16>
    %c0_12 = arith.constant 0 : index
    %c0_13 = arith.constant 0 : index
    %18 = vector.load %arg6[%c0_12, %c0_13] : memref<128x128xbf16, #tpu.memory_space<vmem>>, vector<128x128xbf16>
    %cst_14 = arith.constant dense<0.000000e+00> : vector<8x128xf32>
    %19 = tpu.matmul %17, %18, %cst_14 {dimension_numbers = #tpu.dot_dimension_numbers<[1], [0], [0], [1], [0, 0, 1, 1], [], []>} : vector<8x128xbf16>, vector<128x128xbf16>, vector<8x128xf32> -> vector<8x128xf32>
    %c0_15 = arith.constant 0 : index
    %c0_16 = arith.constant 0 : index
    %20 = vector.load %arg7[%c0_15, %c0_16] : memref<1x128xf32, #tpu.memory_space<vmem>>, vector<1x128xf32>
    %21 = vector.broadcast %20 : vector<1x128xf32> to vector<8x128xf32>
    %22 = arith.addf %19, %21 : vector<8x128xf32>
    %cst_17 = arith.constant dense<0xFF800000> : vector<8xf32>
    %23 = vector.multi_reduction <maximumf>, %22, %cst_17 [1] : vector<8x128xf32> to vector<8xf32>
    %24 = vector.shape_cast %23 : vector<8xf32> to vector<8x1xf32>
    %25 = vector.broadcast %24 : vector<8x1xf32> to vector<8x128xf32>
    %26 = arith.subf %22, %25 : vector<8x128xf32>
    %27 = math.exp %26 : vector<8x128xf32>
    %cst_18 = arith.constant dense<0.000000e+00> : vector<8xf32>
    %28 = vector.multi_reduction <add>, %27, %cst_18 [1] : vector<8x128xf32> to vector<8xf32>
    %29 = vector.shape_cast %28 : vector<8xf32> to vector<8x1xf32>
    %30 = vector.broadcast %29 : vector<8x1xf32> to vector<8x128xf32>
    %31 = arith.divf %27, %30 : vector<8x128xf32>
    %c0_19 = arith.constant 0 : index
    %c0_20 = arith.constant 0 : index
    %32 = vector.load %arg8[%c0_19, %c0_20] : memref<8x128xf32, #tpu.memory_space<vmem>>, vector<8x128xf32>
    tpu.vector_store %arg8[%c0_19, %c0_20], %31 {strides = array<i32>} : memref<8x128xf32, #tpu.memory_space<vmem>>, vector<8x128xf32>,
    return
  }
  func.func @transform_0(%arg0: i32) -> (i32, i32) {
    %c0_i32 = arith.constant 0 : i32
    %c0_i32_0 = arith.constant 0 : i32
    return %arg0, %c0_i32 : i32, i32
  }
  func.func @transform_1(%arg0: i32) -> (i32, i32) {
    %c0_i32 = arith.constant 0 : i32
    %c0_i32_0 = arith.constant 0 : i32
    %c0_i32_1 = arith.constant 0 : i32
    return %c0_i32, %c0_i32_0 : i32, i32
  }
  func.func @transform_2(%arg0: i32) -> (i32, i32) {
    %c0_i32 = arith.constant 0 : i32
    %c0_i32_0 = arith.constant 0 : i32
    %c0_i32_1 = arith.constant 0 : i32
    return %c0_i32, %c0_i32_0 : i32, i32
  }
  func.func @transform_3(%arg0: i32) -> (i32, i32) {
    %c0_i32 = arith.constant 0 : i32
    %c0_i32_0 = arith.constant 0 : i32
    %c0_i32_1 = arith.constant 0 : i32
    return %c0_i32, %c0_i32_0 : i32, i32
  }
  func.func @transform_4(%arg0: i32) -> (i32, i32) {
    %c0_i32 = arith.constant 0 : i32
    %c0_i32_0 = arith.constant 0 : i32
    %c0_i32_1 = arith.constant 0 : i32
    return %c0_i32, %c0_i32_0 : i32, i32
  }
  func.func @transform_5(%arg0: i32) -> (i32, i32) {
    %c0_i32 = arith.constant 0 : i32
    %c0_i32_0 = arith.constant 0 : i32
    %c0_i32_1 = arith.constant 0 : i32
    return %c0_i32, %c0_i32_0 : i32, i32
  }
  func.func @transform_6(%arg0: i32) -> (i32, i32) {
    %c0_i32 = arith.constant 0 : i32
    %c0_i32_0 = arith.constant 0 : i32
    %c0_i32_1 = arith.constant 0 : i32
    return %c0_i32, %c0_i32_0 : i32, i32
  }
  func.func @transform_7(%arg0: i32) -> (i32, i32) {
    %c0_i32 = arith.constant 0 : i32
    %c0_i32_0 = arith.constant 0 : i32
    return %arg0, %c0_i32 : i32, i32
  }
}

</mosaic_0001>

<bundles_post_ra>
// kernel: tpu_custom_call.1
= control target key start
LH: loop header
LB: loop body
LE: loop exit
PB: predicated region body
PF: predicated region fallthrough
CT: control target
= control target key end

     0   :  { %12 = vsyncpa [#allocation3], 0  ;;  %s1559_s0 = inlined_call_operand.hbm [shape: f32[8,1024], index: 0, kind: input, shape index: {}]   ;;  %s1560_s1 = inlined_call_operand.hbm [shape: bf16[1024,128], index: 1, kind: input, shape index: {}]   ;;  %s1561_s2 = inlined_call_operand.vmem [shape: f32[1,128], index: 2, kind: input, shape index: {}]   ;;  %s1562_s3 = inlined_call_operand.hbm [shape: bf16[128,128], index: 3, kind: input, shape index: {}]   ;;  %s1563_s4 = inlined_call_operand.vmem [shape: f32[1,128], index: 4, kind: input, shape index: {}]   ;;  %s1564_s5 = inlined_call_operand.hbm [shape: bf16[128,128], index: 5, kind: input, shape index: {}]   ;;  %s1565_s6 = inlined_call_operand.vmem [shape: f32[1,128], index: 6, kind: input, shape index: {}]   ;;  %s1566_s7 = inlined_call_operand.hbm [shape: f32[8,128], index: 7, kind: output, shape index: {}]  }
   0x1   :  { %13 = vsyncpa [#allocation6], 0 }
   0x2   :  { %14 = vsyncpa [#allocation9], 0 }
   0x3   :  { %15 = vsyncpa [#allocation4], 0  ;;  %s1459_s24 = smov [#allocation5]  }
   0x4   :  { %s31_s25 = sshll.u32 %s1459_s24, 4  ;;  %s32_s25 = int_to_ptr.vmem [resolvable:$true] %s31_s25 }
   0x5   :  { %s1359_s26 = scalar_lea.vmem %s32_s25, 8192  ;;  %p1364_p1 = scmp.lt.s32.totalorder %s32_s25, %s32_s25 }
   0x6   :  { %p1360_p0 = scmp.ne.s32.totalorder %s32_s25, %s1359_s26  ;;  %p1365_p2 = scmp.lt.s32.totalorder %s1359_s26, %s1359_s26 }
   0x8   :  { %p1366_p3 = por %p1365_p2, %p1364_p1 }
   0xa   :  { %p1367_p4 = pnand %p1366_p3, %p1360_p0 }
   0xc   :  { %1370 = shalt.err (!%p1367_p4)
}
   0xd   :  { %s1460_s27 = smov 64   ;;  %s1461_s28 = smov 4  }
   0xe   :  { %37 = dma.hbm_to_vmem [thread:$0]  %s1560_s1, 8192, %s32_s25, [#allocation6], %s1460_s27, %s1460_s27, %s1461_s28  }
   0xf   :  { %s1462_s8 = smov [#allocation2]   ;;  %s1463_s10 = smov [#allocation7]  }
  0x10   :  { %s22_s9 = sshll.u32 %s1462_s8, 4  ;;  %s45_s11 = sshll.u32 %s1463_s10, 4  ;;  %s23_s9 = int_to_ptr.vmem [resolvable:$true] %s22_s9  ;;  %s46_s11 = int_to_ptr.vmem [resolvable:$true] %s45_s11 }
  0x11   :  { %s1379_s12 = scalar_lea.vmem %s23_s9, 1024  ;;  %p1384_p6 = scmp.lt.s32.totalorder %s23_s9, %s23_s9 }
  0x12   :  { %p1380_p5 = scmp.ne.s32.totalorder %s23_s9, %s1379_s12  ;;  %p1385_p7 = scmp.lt.s32.totalorder %s1379_s12, %s1379_s12 }
  0x14   :  { %p1386_p8 = por %p1385_p7, %p1384_p6 }
  0x16   :  { %p1387_p9 = pnand %p1386_p8, %p1380_p5 }
  0x18   :  { %1390 = shalt.err (!%p1387_p9)
}
  0x19   :  { %25 = dma.hbm_to_vmem [thread:$0]  %s1559_s0, 1024, %s23_s9, [#allocation3]  }
  0x1a   :  { %s1399_s15 = scalar_lea.vmem %s46_s11, 1024  ;;  %p1404_p11 = scmp.lt.s32.totalorder %s46_s11, %s46_s11 }
  0x1b   :  { %p1400_p10 = scmp.ne.s32.totalorder %s46_s11, %s1399_s15  ;;  %p1405_p12 = scmp.lt.s32.totalorder %s1399_s15, %s1399_s15 }
  0x1d   :  { %p1406_p13 = por %p1405_p12, %p1404_p11 }
  0x1f   :  { %p1407_p0 = pnand %p1406_p13, %p1400_p10 }
  0x21   :  { %1410 = shalt.err (!%p1407_p0)
}
  0x22   :  { %51 = dma.hbm_to_vmem [thread:$0]  %s1562_s3, 1024, %s46_s11, [#allocation6], %s1460_s27, %s1460_s27, %s1461_s28  }
  0x23   :  { %s1464_s17 = smov [#allocation8]  }
  0x24   :  { %s59_s18 = sshll.u32 %s1464_s17, 4  ;;  %s60_s18 = int_to_ptr.vmem [resolvable:$true] %s59_s18 }
  0x25   :  { %s1419_s19 = scalar_lea.vmem %s60_s18, 1024  ;;  %p1424_p2 = scmp.lt.s32.totalorder %s60_s18, %s60_s18 }
  0x26   :  { %p1420_p1 = scmp.ne.s32.totalorder %s60_s18, %s1419_s19  ;;  %p1425_p3 = scmp.lt.s32.totalorder %s1419_s19, %s1419_s19 }
  0x28   :  { %p1426_p4 = por %p1425_p3, %p1424_p2 }
  0x2a   :  { %p1427_p5 = pnand %p1426_p4, %p1420_p1 }
  0x2c   :  { %1430 = shalt.err (!%p1427_p5)
}
  0x2d   :  { %65 = dma.hbm_to_vmem [thread:$0]  %s1564_s5, 1024, %s60_s18, [#allocation9], %s1460_s27, %s1460_s27, %s1461_s28  }
  0x2e   :  { %1451 = dma.done.wait [#allocation3], 1024  }
  0x2f   :  { %1452 = vsyncadd [#allocation3], 4294966272 }
  0x30   :  { %1453 = dma.done.wait [#allocation6], 9216  }
  0x31   :  { %1454 = vsyncadd [#allocation6], 4294958080 }
  0x32   :  { %1455 = dma.done.wait [#allocation9], 1024  }
  0x33   :  { %1456 = vsyncadd [#allocation9], 4294966272  ;;  %v1267_v0 = vld [vmem:[#allocation5 + $0x78] sm:$0xff]   ;;  %v1271_v4 = vld [vmem:[#allocation5 + $0x70] sm:$0xff]   ;;  %vm1466_vm0 = vmmov 0  }
  0x34   :  { %v1268_v1 = vld [vmem:[#allocation5 + $0xf8] sm:$0xff]   ;;  %1112 = vmatprep.subr.bf16.mxu0 %v1267_v0  ;;  %v1272_v5 = vld [vmem:[#allocation5 + $0xf0] sm:$0xff]   ;;  %v1275_v8 = vld [vmem:[#allocation5 + $0x68] sm:$0xff]  }
  0x35   :  { %v1269_v2 = vld [vmem:[#allocation5 + $0x38] sm:$0xff]   ;;  %1134 = vmatprep.subr.bf16.mxu1 %v1268_v1  ;;  %v1273_v6 = vld [vmem:[#allocation5 + $0x30] sm:$0xff]   ;;  %v1276_v9 = vld [vmem:[#allocation5 + $0xe8] sm:$0xff]  }
  0x36   :  { %v1270_v3 = vld [vmem:[#allocation5 + $0xb8] sm:$0xff]   ;;  %1113 = vmatpush3.bf16.msra.mxu0 %v1269_v2  ;;  %v1274_v7 = vld [vmem:[#allocation5 + $0xb0] sm:$0xff]   ;;  %v1277_v10 = vld [vmem:[#allocation5 + $0x28] sm:$0xff]  }
  0x37   :  { %1135 = vmatpush3.bf16.msra.mxu1 %v1270_v3  ;;  %1114 = vmatprep.subr.bf16.mxu0 %v1271_v4  ;;  %v1278_v11 = vld [vmem:[#allocation5 + $0xa8] sm:$0xff]   ;;  %v1279_v12 = vld [vmem:[#allocation5 + $0x60] sm:$0xff]   ;;  %v1283_v16 = vld [vmem:[#allocation5 + $0x58] sm:$0xff]  }
  0x38   :  { %1136 = vmatprep.subr.bf16.mxu1 %v1272_v5  ;;  %v1280_v13 = vld [vmem:[#allocation5 + $0xe0] sm:$0xff]   ;;  %v1284_v17 = vld [vmem:[#allocation5 + $0xd8] sm:$0xff]   ;;  %v1287_v20 = vld [vmem:[#allocation5 + $0x50] sm:$0xff]  }
  0x39   :  { %v1281_v14 = vld [vmem:[#allocation5 + $0x20] sm:$0xff]   ;;  %v1285_v18 = vld [vmem:[#allocation5 + $0x18] sm:$0xff]   ;;  %v1288_v21 = vld [vmem:[#allocation5 + $0xd0] sm:$0xff]  }
  0x3a   :  { %1115 = vmatpush3.bf16.msra.mxu0 %v1273_v6  ;;  %v1282_v15 = vld [vmem:[#allocation5 + $0xa0] sm:$0xff]   ;;  %v1286_v19 = vld [vmem:[#allocation5 + $0x98] sm:$0xff]   ;;  %v1289_v22 = vld [vmem:[#allocation5 + $0x10] sm:$0xff]  }
  0x3b   :  { %1137 = vmatpush3.bf16.msra.mxu1 %v1274_v7  ;;  %1116 = vmatprep.subr.bf16.mxu0 %v1275_v8  ;;  %v1290_v23 = vld [vmem:[#allocation5 + $0x90] sm:$0xff]   ;;  %v1291_v24 = vld [vmem:[#allocation5 + $0x48] sm:$0xff]   ;;  %v1295_v28 = vld [vmem:[#allocation5 + $0x40] sm:$0xff]  }
  0x3c   :  { %1138 = vmatprep.subr.bf16.mxu1 %v1276_v9  ;;  %v1292_v25 = vld [vmem:[#allocation5 + $0xc8] sm:$0xff]   ;;  %v1296_v29 = vld [vmem:[#allocation5 + $0xc0] sm:$0xff]   ;;  %v84_v33 = vld [vmem:[#allocation2 + $0x18] sm:$0xff] }
  0x3d   :  { %v1293_v26 = vld [vmem:[#allocation5 + $0x8] sm:$0xff]   ;;  %v1297_v30 = vld [vmem:[#allocation5] sm:$0xff]   ;;  %v92_v36 = vpack.c.bf16 %v84_v33, %v84_v33  ;;  %v83_v38 = vld [vmem:[#allocation2 + $0x10] sm:$0xff] }
  0x3e   :  { %1117 = vmatpush3.bf16.msra.mxu0 %v1277_v10  ;;  %v1294_v27 = vld [vmem:[#allocation5 + $0x88] sm:$0xff]   ;;  %v1298_v31 = vld [vmem:[#allocation5 + $0x80] sm:$0xff]   ;;  %v91_v39 = vpack.c.bf16 %v83_v38, %v83_v38  ;;  %v1299_v40 = vld [vmem:[#allocation5 + $0x178] sm:$0xff]  }
  0x3f   :  { %1139 = vmatpush3.bf16.msra.mxu1 %v1278_v11  ;;  %1118 = vmatprep.subr.bf16.mxu0 %v1279_v12  ;;  %v82_v32 = vld [vmem:[#allocation2 + $0x8] sm:$0xff]  ;;  %v81_v34 = vld [vmem:[#allocation2] sm:$0xff]  ;;  %v1300_v41 = vld [vmem:[#allocation5 + $0x1f8] sm:$0xff]  }
  0x40   :  { %1140 = vmatprep.subr.bf16.mxu1 %v1280_v13  ;;  %v90_v35 = vpack.c.bf16 %v82_v32, %v82_v32  ;;  %v89_v37 = vpack.c.bf16 %v81_v34, %v81_v34  ;;  %688 = vmatprep.mubr.bf16.mxu1 %v92_v36  ;;  %v1301_v42 = vld [vmem:[#allocation5 + $0x138] sm:$0xff]   ;;  %v1303_v44 = vld [vmem:[#allocation5 + $0x170] sm:$0xff]   ;;  %v1307_v48 = vld [vmem:[#allocation5 + $0x168] sm:$0xff]  }
  0x41   :  { %v1302_v43 = vld [vmem:[#allocation5 + $0x1b8] sm:$0xff]   ;;  %v1304_v45 = vld [vmem:[#allocation5 + $0x1f0] sm:$0xff]   ;;  %v1308_v49 = vld [vmem:[#allocation5 + $0x1e8] sm:$0xff]  }
  0x42   :  { %1119 = vmatpush3.bf16.msra.mxu0 %v1281_v14  ;;  %648 = vmatprep.mubr.bf16.mxu0 %v90_v35  ;;  %v1305_v46 = vld [vmem:[#allocation5 + $0x130] sm:$0xff]   ;;  %v1309_v50 = vld [vmem:[#allocation5 + $0x128] sm:$0xff]   ;;  %v1311_v52 = vld [vmem:[#allocation5 + $0x160] sm:$0xff]  }
  0x43   :  { %1141 = vmatpush3.bf16.msra.mxu1 %v1282_v15  ;;  %1120 = vmatprep.subr.bf16.mxu0 %v1283_v16  ;;  %v1306_v47 = vld [vmem:[#allocation5 + $0x1b0] sm:$0xff]   ;;  %v1310_v51 = vld [vmem:[#allocation5 + $0x1a8] sm:$0xff]   ;;  %v1312_v53 = vld [vmem:[#allocation5 + $0x1e0] sm:$0xff]  }
  0x44   :  { %1142 = vmatprep.subr.bf16.mxu1 %v1284_v17  ;;  %v1313_v54 = vld [vmem:[#allocation5 + $0x120] sm:$0xff]   ;;  %v1315_v56 = vld [vmem:[#allocation5 + $0x158] sm:$0xff]   ;;  %v1319_v60 = vld [vmem:[#allocation5 + $0x150] sm:$0xff]   ;;  %v1465_v17 = vmov 0.0  }
  0x45   :  { %v1314_v55 = vld [vmem:[#allocation5 + $0x1a0] sm:$0xff]   ;;  %v1316_v57 = vld [vmem:[#allocation5 + $0x1d8] sm:$0xff]   ;;  %v1320_v61 = vld [vmem:[#allocation5 + $0x1d0] sm:$0xff]  }
  0x46   :  { %1121 = vmatpush3.bf16.msra.mxu0 %v1285_v18  ;;  %v1317_v58 = vld [vmem:[#allocation5 + $0x118] sm:$0xff]   ;;  %v1321_v62 = vld [vmem:[#allocation5 + $0x110] sm:$0xff]   ;;  %v1323_v0 = vld [vmem:[#allocation5 + $0x148] sm:$0xff]  }
  0x47   :  { %1143 = vmatpush3.bf16.msra.mxu1 %v1286_v19  ;;  %1122 = vmatprep.subr.bf16.mxu0 %v1287_v20  ;;  %v1318_v59 = vld [vmem:[#allocation5 + $0x198] sm:$0xff]   ;;  %v1322_v63 = vld [vmem:[#allocation5 + $0x190] sm:$0xff]   ;;  %v1324_v1 = vld [vmem:[#allocation5 + $0x1c8] sm:$0xff]  }
  0x48   :  { %1144 = vmatprep.subr.bf16.mxu1 %v1288_v21  ;;  %v1325_v2 = vld [vmem:[#allocation5 + $0x108] sm:$0xff]   ;;  %v1327_v4 = vld [vmem:[#allocation5 + $0x140] sm:$0xff]   ;;  %v88_v9 = vld [vmem:[#allocation2 + $0x38] sm:$0xff] }
  0x49   :  { %v1326_v3 = vld [vmem:[#allocation5 + $0x188] sm:$0xff]   ;;  %v1328_v5 = vld [vmem:[#allocation5 + $0x1c0] sm:$0xff]   ;;  %v96_v11 = vpack.c.bf16 %v88_v9, %v88_v9  ;;  %v87_v13 = vld [vmem:[#allocation2 + $0x30] sm:$0xff] }
  0x4a   :  { %1123 = vmatpush3.bf16.msra.mxu0 %v1289_v22  ;;  %v1329_v6 = vld [vmem:[#allocation5 + $0x100] sm:$0xff]   ;;  %v86_v8 = vld [vmem:[#allocation2 + $0x28] sm:$0xff]  ;;  %v95_v15 = vpack.c.bf16 %v87_v13, %v87_v13  ;;  %v1331_v16 = vld [vmem:[#allocation7 + $0x38] sm:$0xff]  }
  0x4b   :  { %1145 = vmatpush3.bf16.msra.mxu1 %v1290_v23  ;;  %1124 = vmatprep.subr.bf16.mxu0 %v1291_v24  ;;  %v1330_v7 = vld [vmem:[#allocation5 + $0x180] sm:$0xff]   ;;  %v94_v10 = vpack.c.bf16 %v86_v8, %v86_v8  ;;  %v1332_v18 = vld [vmem:[#allocation7 + $0x30] sm:$0xff]   ;;  %v1333_v19 = vld [vmem:[#allocation7 + $0x28] sm:$0xff]  }
  0x4c   :  { %1146 = vmatprep.subr.bf16.mxu1 %v1292_v25  ;;  %v85_v12 = vld [vmem:[#allocation2 + $0x20] sm:$0xff]  ;;  %v1335_v21 = vld [vmem:[#allocation7 + $0x18] sm:$0xff]   ;;  %v1336_v22 = vld [vmem:[#allocation7 + $0x10] sm:$0xff]  }
  0x4d   :  { %v93_v14 = vpack.c.bf16 %v85_v12, %v85_v12  ;;  %v1334_v20 = vld [vmem:[#allocation7 + $0x20] sm:$0xff]   ;;  %v1337_v23 = vld [vmem:[#allocation7 + $0x8] sm:$0xff]   ;;  %v1339_v25 = vld [vmem:[#allocation8 + $0x38] sm:$0xff]  }
  0x4e   :  { %1125 = vmatpush3.bf16.msra.mxu0 %v1293_v26  ;;  %v1338_v24 = vld [vmem:[#allocation7] sm:$0xff]   ;;  %v1340_v26 = vld [vmem:[#allocation8 + $0x30] sm:$0xff]  }
  0x4f   :  { %1147 = vmatpush3.bf16.msra.mxu1 %v1294_v27  ;;  %1126 = vmatprep.subr.bf16.mxu0 %v1295_v28  ;;  %v1341_v27 = vld [vmem:[#allocation8 + $0x28] sm:$0xff]   ;;  %v1342_v28 = vld [vmem:[#allocation8 + $0x20] sm:$0xff]  }
  0x50   :  { %1148 = vmatprep.subr.bf16.mxu1 %v1296_v29  ;;  %v1343_v29 = vld [vmem:[#allocation8 + $0x18] sm:$0xff]  }
  0x52   :  { %1127 = vmatpush3.bf16.msra.mxu0 %v1297_v30  ;;  %v1344_v30 = vld [vmem:[#allocation8 + $0x10] sm:$0xff]  }
  0x53   :  { %1149 = vmatpush3.bf16.msra.mxu1 %v1298_v31  ;;  %1156 = vmatprep.subr.bf16.mxu0 %v1299_v40  ;;  %v1029_v40 = vld [vmem:[%s1561_s2] ss:$0 sm:$0xff] }
  0x54   :  { %1178 = vmatprep.subr.bf16.mxu1 %v1300_v41 }
  0x55   :  { %649 = vmatmul.mubr.bf16.vlgmr.msra.gmra.mxu0 %v89_v37 }
  0x56   :  { %689 = vmatmul.mubr.bf16.vlgmr.msra.gmra.mxu1 %v91_v39  ;;  %1157 = vmatpush3.bf16.msra.mxu0 %v1301_v42 }
  0x57   :  { %1179 = vmatpush3.bf16.msra.mxu1 %v1302_v43  ;;  %1158 = vmatprep.subr.bf16.mxu0 %v1303_v44 }
  0x58   :  { %1180 = vmatprep.subr.bf16.mxu1 %v1304_v45  ;;  %728 = vmatprep.mubr.bf16.mxu0 %v94_v10 }
  0x59   :  { %768 = vmatprep.mubr.bf16.mxu1 %v96_v11 }
  0x5a   :  { %1159 = vmatpush3.bf16.msra.mxu0 %v1305_v46 }
  0x5b   :  { %1181 = vmatpush3.bf16.msra.mxu1 %v1306_v47  ;;  %1160 = vmatprep.subr.bf16.mxu0 %v1307_v48 }
  0x5c   :  { %1182 = vmatprep.subr.bf16.mxu1 %v1308_v49 }
  0x5e   :  { %1161 = vmatpush3.bf16.msra.mxu0 %v1309_v50 }
  0x5f   :  { %1183 = vmatpush3.bf16.msra.mxu1 %v1310_v51  ;;  %1162 = vmatprep.subr.bf16.mxu0 %v1311_v52 }
  0x60   :  { %1184 = vmatprep.subr.bf16.mxu1 %v1312_v53 }
  0x62   :  { %1163 = vmatpush3.bf16.msra.mxu0 %v1313_v54 }
  0x63   :  { %1185 = vmatpush3.bf16.msra.mxu1 %v1314_v55  ;;  %1164 = vmatprep.subr.bf16.mxu0 %v1315_v56 }
  0x64   :  { %1186 = vmatprep.subr.bf16.mxu1 %v1316_v57 }
  0x66   :  { %1165 = vmatpush3.bf16.msra.mxu0 %v1317_v58  ;;  %v1345_v58 = vld [vmem:[#allocation8 + $0x8] sm:$0xff]  }
  0x67   :  { %1187 = vmatpush3.bf16.msra.mxu1 %v1318_v59  ;;  %1166 = vmatprep.subr.bf16.mxu0 %v1319_v60  ;;  %v1346_v59 = vld [vmem:[#allocation8] sm:$0xff]  }
  0x68   :  { %1188 = vmatprep.subr.bf16.mxu1 %v1320_v61  ;;  %v1094_v60 = vld [vmem:[%s1563_s4] ss:$0 sm:$0xff]  ;;  %s1467_s4 = smov [#allocation10]  }
  0x69   :  { %s1018_s24 = sshll.u32 %s1467_s4, 4  ;;  %s1019_s24 = int_to_ptr.vmem [resolvable:$true] %s1018_s24 }
  0x6a   :  { %1167 = vmatpush3.bf16.msra.mxu0 %v1321_v62  ;;  %p1436_p7 = scmp.lt.s32.totalorder %s1019_s24, %s1019_s24 }
  0x6b   :  { %1189 = vmatpush3.bf16.msra.mxu1 %v1322_v63  ;;  %1168 = vmatprep.subr.bf16.mxu0 %v1323_v0 }
  0x6c   :  { %1190 = vmatprep.subr.bf16.mxu1 %v1324_v1 }
  0x6e   :  { %1169 = vmatpush3.bf16.msra.mxu0 %v1325_v2 }
  0x6f   :  { %1191 = vmatpush3.bf16.msra.mxu1 %v1326_v3  ;;  %1170 = vmatprep.subr.bf16.mxu0 %v1327_v4  ;;  %v1103_v4 = vld [vmem:[%s1565_s6] ss:$0 sm:$0xff]  ;;  %s1431_s6 = scalar_lea.vmem %s1019_s24, 128 }
  0x70   :  { %1192 = vmatprep.subr.bf16.mxu1 %v1328_v5  ;;  %p1432_p6 = scmp.ne.s32.totalorder %s1019_s24, %s1431_s6  ;;  %p1437_p8 = scmp.lt.s32.totalorder %s1431_s6, %s1431_s6 }
  0x72   :  { %1171 = vmatpush3.bf16.msra.mxu0 %v1329_v6  ;;  %p1438_p9 = por %p1437_p8, %p1436_p7 }
  0x73   :  { %1193 = vmatpush3.bf16.msra.mxu1 %v1330_v7  ;;  %1218 = vmatprep.subr.bf16.mxu0 %v1465_v17 }
  0x74   :  { %1238 = vmatprep.subr.bf16.mxu1 %v1465_v17  ;;  %p1439_p10 = pnand %p1438_p9, %p1432_p6 }
  0x75   :  { %729 = vmatmul.mubr.bf16.vlgmr.msra.gmra.mxu0 %v93_v14 }
  0x76   :  { %769 = vmatmul.mubr.bf16.vlgmr.msra.gmra.mxu1 %v95_v15  ;;  %1219 = vmatpush3.bf16.msra.mxu0 %v1331_v16 }
  0x77   :  { %1220 = vmatprep.subr.bf16.mxu0 %v1465_v17  ;;  %1234 = vmatprep.mubr.msk.bf16.mxu0 %vm1466_vm0, %v1465_v17 }
  0x78   :  { %1254 = vmatprep.mubr.msk.bf16.mxu1 %vm1466_vm0, %v1465_v17  ;;  %1239 = vmatpush3.bf16.msra.mxu1 %v1339_v25 }
  0x79   :  { %1240 = vmatprep.subr.bf16.mxu1 %v1465_v17 }
  0x7a   :  { %1221 = vmatpush3.bf16.msra.mxu0 %v1332_v18 }
  0x7b   :  { %1222 = vmatprep.subr.bf16.mxu0 %v1465_v17 }
  0x7c   :  { %1241 = vmatpush3.bf16.msra.mxu1 %v1340_v26 }
  0x7d   :  { %1242 = vmatprep.subr.bf16.mxu1 %v1465_v17 }
  0x7e   :  { %1223 = vmatpush3.bf16.msra.mxu0 %v1333_v19 }
  0x7f   :  { %1224 = vmatprep.subr.bf16.mxu0 %v1465_v17 }
  0x80   :  { %1243 = vmatpush3.bf16.msra.mxu1 %v1341_v27 }
  0x81   :  { %1244 = vmatprep.subr.bf16.mxu1 %v1465_v17 }
  0x82   :  { %1225 = vmatpush3.bf16.msra.mxu0 %v1334_v20 }
  0x83   :  { %1226 = vmatprep.subr.bf16.mxu0 %v1465_v17 }
  0x84   :  { %1245 = vmatpush3.bf16.msra.mxu1 %v1342_v28 }
  0x85   :  { %1246 = vmatprep.subr.bf16.mxu1 %v1465_v17 }
  0x86   :  { %1227 = vmatpush3.bf16.msra.mxu0 %v1335_v21 }
  0x87   :  { %1228 = vmatprep.subr.bf16.mxu0 %v1465_v17 }
  0x88   :  { %1247 = vmatpush3.bf16.msra.mxu1 %v1343_v29 }
  0x89   :  { %1248 = vmatprep.subr.bf16.mxu1 %v1465_v17 }
  0x8a   :  { %1229 = vmatpush3.bf16.msra.mxu0 %v1336_v22 }
  0x8b   :  { %1230 = vmatprep.subr.bf16.mxu0 %v1465_v17 }
  0x8c   :  { %1249 = vmatpush3.bf16.msra.mxu1 %v1344_v30 }
  0x8d   :  { %1250 = vmatprep.subr.bf16.mxu1 %v1465_v17 }
  0x8e   :  { %1231 = vmatpush3.bf16.msra.mxu0 %v1337_v23 }
  0x8f   :  { %1232 = vmatprep.subr.bf16.mxu0 %v1465_v17 }
  0x90   :  { %1251 = vmatpush3.bf16.msra.mxu1 %v1345_v58 }
  0x91   :  { %1252 = vmatprep.subr.bf16.mxu1 %v1465_v17 }
  0x92   :  { %1233 = vmatpush3.bf16.msra.mxu0 %v1338_v24 }
  0x94   :  { %1253 = vmatpush3.bf16.msra.mxu1 %v1346_v59 }
 0x115   :  { %v1128_v31 = vpop.f32.mrf.mxu0 }
 0x116   :  { %v1150_v32 = vpop.f32.mrf.mxu1 }
 0x117   :  { %v1129_v33 = vpop.f32.mrf.mxu0 }
 0x118   :  { %v1151_v34 = vpop.f32.mrf.mxu1  ;;  %v1130_v39 = vadd.f32 %v1129_v33, %v1128_v31 }
 0x119   :  { %v1131_v35 = vpop.f32.mrf.mxu0  ;;  %v1152_v42 = vadd.f32 %v1151_v34, %v1150_v32 }
 0x11a   :  { %v1153_v36 = vpop.f32.mrf.mxu1  ;;  %v651_v41 = vadd.f32 %v1130_v39, %v1029_v40 }
 0x11b   :  { %v1132_v37 = vpop.f32.mrf.mxu0 }
 0x11c   :  { %v1154_v38 = vpop.f32.mrf.mxu1  ;;  %v691_v46 = vadd.f32 %v1152_v42, %v651_v41 }
 0x135   :  { %v1172_v43 = vpop.f32.mrf.mxu0 }
 0x136   :  { %v1194_v44 = vpop.f32.mrf.mxu1 }
 0x137   :  { %v1173_v45 = vpop.f32.mrf.mxu0 }
 0x138   :  { %v1174_v47 = vadd.f32 %v1173_v45, %v1172_v43  ;;  %v1195_v48 = vpop.f32.mrf.mxu1 }
 0x139   :  { %v1175_v49 = vpop.f32.mrf.mxu0  ;;  %v1196_v51 = vadd.f32 %v1195_v48, %v1194_v44 }
 0x13a   :  { %v731_v50 = vadd.f32 %v1174_v47, %v691_v46  ;;  %v1197_v52 = vpop.f32.mrf.mxu1 }
 0x13b   :  { %v1176_v53 = vpop.f32.mrf.mxu0 }
 0x13c   :  { %v771_v54 = vadd.f32 %v1196_v51, %v731_v50  ;;  %v1198_v55 = vpop.f32.mrf.mxu1 }
 0x13e   :  { %v776_v56 = vmax.f32 %v771_v54, 0.0 }
 0x140   :  { %v777_v57 = vpack.c.bf16 %v776_v56, %v776_v56 }
 0x142   :  { %1235 = vmatmul.mubr.bf16.vlgmr.msra.gmra.mxu0 %v777_v57 }
 0x202   :  { %v883_v61 = vpop.f32.mrf.mxu0 }
 0x203   :  { %v884_v62 = vadd.f32 %v1094_v60, %v883_v61 }
 0x204   :  { %v1236_v63 = vpop.f32.mrf.mxu0 }
 0x205   :  { %v889_v0 = vmax.f32 %v884_v62, 0.0 }
 0x206   :  { %v886_v1 = vpop.f32.mrf.mxu0 }
 0x207   :  { %v890_v2 = vpack.c.bf16 %v889_v0, %v889_v0 }
 0x208   :  { %v1237_v3 = vpop.f32.mrf.mxu0 }
 0x209   :  { %1255 = vmatmul.mubr.bf16.vlgmr.msra.gmra.mxu1 %v890_v2 }
 0x2c9   :  { %v996_v5 = vpop.f32.mrf.mxu1 }
 0x2ca   :  { %v997_v6 = vadd.f32 %v1103_v4, %v996_v5 }
 0x2cb   :  { %v1256_v7 = vpop.f32.mrf.mxu1 }
 0x2cc   :  { %1002 = vmax.xlane.f32.xlu0 %v997_v6 }
 0x2cd   :  { %v999_v8 = vpop.f32.mrf.mxu1 }
 0x2cf   :  { %v1257_v9 = vpop.f32.mrf.mxu1 }
 0x355   :  { %v1003_v10 = vpop.xlane.xlu0 %1002 }
 0x356   :  { %v1004_v11 = vsub.f32 %v997_v6, %v1003_v10 }
 0x358   :  { %v1005_v12 = vmul.f32 1.442695, %v1004_v11 }
 0x35a   :  { %1347 = vpow2.f32 %v1005_v12 }
 0x367   :  { %v1348_v13 = vpop.eup %1347 }
 0x368   :  { %1007 = vadd.xlane.f32.xlu0 %v1348_v13 }
 0x3f1   :  { %v1008_v14 = vpop.xlane.xlu0 %1007 }
 0x3f2   :  { %1349 = vrcp.f32 %v1008_v14 }
 0x3ff   :  { %v1350_v15 = vpop.eup %1349 }
 0x400   :  { %v1010_v16 = vmul.f32 %v1350_v15, %v1348_v13 }
 0x402   :  { %1011 = vst [vmem:[#allocation10] sm:$0xff] %v1010_v16 }
 0x403   :  { %1442 = shalt.err (!%p1439_p10)
}
 0x404   :  { %1021 = dma.vmem_to_hbm [thread:$0]  %s1019_s24, 128, %s1566_s7, [#allocation4]  }
 0x405   :  { %1457 = dma.done.wait [#allocation4], 128  }
 0x406   :  { %1458 = vsyncadd [#allocation4], 4294967168 }
 0x407   :  { %1025 = vsyncpa [#allocation3], 1 }
 0x408   :  { %1026 = vsyncpa [#allocation6], 1 }
 0x409   :  { %1027 = vsyncpa [#allocation9], 1 }
 0x40a   :  { %1028 = vsyncpa [#allocation4], 1 }

</bundles_post_ra>
